<compile_context>
chip_gen: v5e
topology: v5e:2x2
jax: 0.10.0
libtpu: 0.0.40
codegen_flags: <defaults>
</compile_context>

<pallas_src>
import functools

import jax
import jax.numpy as jnp
from jax.experimental import pallas as pl
from jax.experimental.pallas import tpu as pltpu

P = 53                  # vocab size / number of output classes
HIDDEN = 32             # hidden dim
P_EMB = 64              # embedding rows padded so the combined one-hot is 128 lanes
ONE_HOT_W = 2 * P_EMB   # 128: combined one-hot width (one full lane tile)
P_OUT = 128             # logits padded to a full lane tile (lane-dense, unmasked vst)
TILE_B_MIN = 128        # batch tile granularity (multiple of 8 sublanes)
TILE_B_MAX = 512        # cap to keep one-hot / logits vreg live-ranges modest
BATCH = 200             # example batch (pads to 256 -> 2 grid steps -> both TCs on v7x)

# Static guards: the one-hot compare against a P_EMB-wide range silently drops
# out-of-range ids, so a vocab bump past P_EMB must fail loudly here.
assert P <= P_EMB, "vocab must fit padded embedding rows (ids >= P_EMB would be dropped)"
assert P <= P_OUT, "vocab must fit the padded logits lane tile"
assert ONE_HOT_W == 128, "combined one-hot must be exactly one 128-lane tile"


def _fused_kernel(tok_ref, embd_ref, w1_ref, b1_ref, w2_ref, b2_ref,
                  w3_ref, b3_ref, o_ref):
    # tok_ref : (TILE_B, 2) int32; column 0 = token_a, column 1 = token_b + P_EMB
    # embd_ref: (128, 2H)   block-diagonal [E 0; 0 E] (rows >= P in each block zero)
    # w1      : (2H, H)     b1: (1, H)
    # w2      : (H, H)      b2: (1, H)
    # w3      : (H, 128)    columns >= P are zero; b3: (1, 128)
    # o_ref   : (TILE_B, 128) padded logits
    tile_b = tok_ref.shape[0]
    tok = tok_ref[...]
    lane = jax.lax.broadcasted_iota(jnp.int32, (tile_b, ONE_HOT_W), 1)
    # Combined one-hot for both tokens in a single 128-lane compare pass
    # (second token pre-shifted by P_EMB in the wrapper).
    hit = (lane == tok[:, 0:1]) | (lane == tok[:, 1:2])
    oh = jnp.where(hit, jnp.float32(1.0), jnp.float32(0.0))        # (TILE_B, 128)

    # Gather-and-concat of both embeddings as one K=128 MXU matmul:
    #   [oh_a | oh_b] @ [[E, 0], [0, E]] == [E[tok_a] | E[tok_b]]   (exact)
    e = jnp.dot(oh, embd_ref[...], preferred_element_type=jnp.float32)   # (TILE_B, 2H)

    h1 = jnp.dot(e, w1_ref[...], preferred_element_type=jnp.float32) + b1_ref[...]
    h1 = jnp.maximum(h1, 0.0)
    h2 = jnp.dot(h1, w2_ref[...], preferred_element_type=jnp.float32) + b2_ref[...]
    h2 = jnp.maximum(h2, 0.0)
    o_ref[...] = (jnp.dot(h2, w3_ref[...], preferred_element_type=jnp.float32)
                  + b3_ref[...])                                    # (TILE_B, 128)


def _fused_forward_padded(tok_pad, embd, w1, b1, w2, b2, w3, b3, *, tile_b):
    """tok_pad: (B_pad, 2) int32 (second column pre-shifted by P_EMB),
    B_pad % tile_b == 0  ->  padded logits (B_pad, P_OUT) f32."""
    B_pad = tok_pad.shape[0]
    H = HIDDEN
    resident = lambda i: (0, 0)   # weights / table stay VMEM-resident across steps
    return pl.pallas_call(
        _fused_kernel,
        out_shape=jax.ShapeDtypeStruct((B_pad, P_OUT), jnp.float32),
        grid_spec=pltpu.PrefetchScalarGridSpec(
            num_scalar_prefetch=0,
            grid=(B_pad // tile_b,),
            in_specs=[
                pl.BlockSpec((tile_b, 2), lambda i: (i, 0)),      # tokens
                pl.BlockSpec((ONE_HOT_W, 2 * H), resident),       # block-diag emb
                pl.BlockSpec((2 * H, H), resident),               # w1
                pl.BlockSpec((1, H), resident),                   # b1
                pl.BlockSpec((H, H), resident),                   # w2
                pl.BlockSpec((1, H), resident),                   # b2
                pl.BlockSpec((H, P_OUT), resident),               # w3 (padded cols)
                pl.BlockSpec((1, P_OUT), resident),               # b3 (padded cols)
            ],
            out_specs=pl.BlockSpec((tile_b, P_OUT), lambda i: (i, 0)),
        ),
        compiler_params=pltpu.CompilerParams(
            dimension_semantics=("parallel",)),
    )(tok_pad, embd, w1, b1, w2, b2, w3, b3)


def _choose_tile_b(batch):
    """Big tiles to amortize per-step overhead, but keep >=2 grid steps whenever
    the batch allows so v7x can split the 'parallel' axis across both TCs."""
    if batch <= TILE_B_MIN:
        return TILE_B_MIN
    tile = min(TILE_B_MAX, pl.cdiv(batch, 2))
    return pl.cdiv(tile, TILE_B_MIN) * TILE_B_MIN


def _pad_and_shift_tokens(x_tokens, tile_b):
    """Pad the batch to a tile multiple and pre-shift the second token by P_EMB
    (done once here so the kernel needs a single compare pass per step)."""
    B = x_tokens.shape[0]
    B_pad = pl.cdiv(B, tile_b) * tile_b
    tok = x_tokens.astype(jnp.int32) + jnp.array([0, P_EMB], jnp.int32)
    return jnp.zeros((B_pad, 2), jnp.int32).at[:B, :].set(tok)


@functools.partial(jax.jit, static_argnames=("tile_b",))
def model_forward_padded(tok_pad, params, *, tile_b):
    """Preferred entry point: returns lane-dense padded logits (B_pad, P_OUT).
    Downstream losses should mask the padded rows / columns instead of slicing."""
    return _fused_forward_padded(
        tok_pad,
        params["embd"],
        params["w1"], params["b1"],
        params["w2"], params["b2"],
        params["w3"], params["b3"],
        tile_b=tile_b)


def model_forward(x_tokens, params):
    """Convenience wrapper matching the PyTorch forward: (B, 2) tokens -> (B, P)."""
    B = x_tokens.shape[0]
    tile_b = _choose_tile_b(B)
    tok_pad = _pad_and_shift_tokens(x_tokens, tile_b)
    logits_pad = model_forward_padded(tok_pad, params, tile_b=tile_b)
    return logits_pad[:B, :P]


def init_params(key):
    """Deterministic init mimicking nn.Embedding (normal) / nn.Linear (uniform),
    stored directly in the kernel-friendly padded layout."""
    H = HIDDEN
    k_emb, k1, kb1, k2, kb2, k3, kb3 = jax.random.split(key, 7)

    def lin(kw, kb, fan_in, fan_out):
        bound = 1.0 / (fan_in ** 0.5)
        w = jax.random.uniform(kw, (fan_in, fan_out), jnp.float32, -bound, bound)
        b = jax.random.uniform(kb, (1, fan_out), jnp.float32, -bound, bound)
        return w, b

    # Embedding table (P, H), normal init; stored block-diagonally so the kernel
    # gathers-and-concats both tokens with one (TILE_B,128)@(128,2H) matmul.
    emb = jax.random.normal(k_emb, (P, H), jnp.float32)
    embd = jnp.zeros((ONE_HOT_W, 2 * H), jnp.float32)
    embd = embd.at[:P, :H].set(emb)
    embd = embd.at[P_EMB:P_EMB + P, H:].set(emb)

    # Linear 1: (2H, H) kept whole (kernel consumes the concatenated embedding).
    w1, b1 = lin(k1, kb1, 2 * H, H)
    # Linear 2: (H, H).
    w2, b2 = lin(k2, kb2, H, H)
    # Linear 3: (H, P) zero-padded to (H, P_OUT) for lane-dense, unmasked stores.
    w3, b3 = lin(k3, kb3, H, P)
    w3_pad = jnp.zeros((H, P_OUT), jnp.float32).at[:, :P].set(w3)
    b3_pad = jnp.zeros((1, P_OUT), jnp.float32).at[:, :P].set(b3)

    return {"embd": embd,
            "w1": w1, "b1": b1,
            "w2": w2, "b2": b2,
            "w3": w3_pad, "b3": b3_pad}


if __name__ == "__main__":
    key = jax.random.PRNGKey(0)
    k_params, k_x = jax.random.split(key)
    params = init_params(k_params)
    x = jax.random.randint(k_x, (BATCH, 2), 0, P, dtype=jnp.int32)

    logits = model_forward(x, params)
    jax.block_until_ready(logits)

    # Pure-JAX reference of the same math (gather + dense MLP).
    emb_tab = params["embd"][:P, :HIDDEN]                        # (P, H)
    e = jnp.take(emb_tab, x, axis=0).reshape(BATCH, 2 * HIDDEN)  # (B, 2H)
    h1 = jnp.maximum(e @ params["w1"] + params["b1"], 0.0)
    h2 = jnp.maximum(h1 @ params["w2"] + params["b2"], 0.0)
    ref = h2 @ params["w3"][:, :P] + params["b3"][:, :P]

    assert logits.shape == (BATCH, P)
    assert jnp.allclose(logits, ref, atol=1e-4, rtol=1e-4), (
        float(jnp.max(jnp.abs(logits - ref))))

    print("KERNEL_OK")
</pallas_src>

<mosaic_0001>
module attributes {stable_mosaic.version = 11 : i64} {
  func.func @_fused_kernel(%arg0: i32, %arg1: memref<128x2xi32, #tpu.memory_space<vmem>>, %arg2: memref<128x64xf32, #tpu.memory_space<vmem>>, %arg3: memref<64x32xf32, #tpu.memory_space<vmem>>, %arg4: memref<1x32xf32, #tpu.memory_space<vmem>>, %arg5: memref<32x32xf32, #tpu.memory_space<vmem>>, %arg6: memref<1x32xf32, #tpu.memory_space<vmem>>, %arg7: memref<32x128xf32, #tpu.memory_space<vmem>>, %arg8: memref<1x128xf32, #tpu.memory_space<vmem>>, %arg9: memref<128x128xf32, #tpu.memory_space<vmem>>) attributes {dimension_semantics = [#tpu.dimension_semantics<parallel>], iteration_bounds = array<i64: 2>, scalar_prefetch = 0 : i64, scratch_operands = 0 : i64, tpu.core_type = #tpu.core_type<tc>, window_params = [{transform_indices = @transform_0, window_bounds = array<i64: 128, 2>}, {pipeline_mode = #tpu.pipeline_mode<synchronous>, transform_indices = @transform_1, window_bounds = array<i64: 128, 64>}, {pipeline_mode = #tpu.pipeline_mode<synchronous>, transform_indices = @transform_2, window_bounds = array<i64: 64, 32>}, {pipeline_mode = #tpu.pipeline_mode<synchronous>, transform_indices = @transform_3, window_bounds = array<i64: 1, 32>}, {pipeline_mode = #tpu.pipeline_mode<synchronous>, transform_indices = @transform_4, window_bounds = array<i64: 32, 32>}, {pipeline_mode = #tpu.pipeline_mode<synchronous>, transform_indices = @transform_5, window_bounds = array<i64: 1, 32>}, {pipeline_mode = #tpu.pipeline_mode<synchronous>, transform_indices = @transform_6, window_bounds = array<i64: 32, 128>}, {pipeline_mode = #tpu.pipeline_mode<synchronous>, transform_indices = @transform_7, window_bounds = array<i64: 1, 128>}, {transform_indices = @transform_8, window_bounds = array<i64: 128, 128>}]} {
    %c0 = arith.constant 0 : index
    %c0_0 = arith.constant 0 : index
    %0 = vector.load %arg1[%c0, %c0_0] : memref<128x2xi32, #tpu.memory_space<vmem>>, vector<128x2xi32>
    %1 = tpu.iota {dimensions = array<i32: 1>} : vector<128x128xi32>
    %2 = vector.extract_strided_slice %0 {offsets = [0, 0], sizes = [128, 1], strides = [1, 1]} : vector<128x2xi32> to vector<128x1xi32>
    %3 = vector.broadcast %2 : vector<128x1xi32> to vector<128x128xi32>
    %4 = arith.cmpi eq, %1, %3 : vector<128x128xi32>
    %5 = vector.extract_strided_slice %0 {offsets = [0, 1], sizes = [128, 1], strides = [1, 1]} : vector<128x2xi32> to vector<128x1xi32>
    %6 = vector.broadcast %5 : vector<128x1xi32> to vector<128x128xi32>
    %7 = arith.cmpi eq, %1, %6 : vector<128x128xi32>
    %8 = arith.ori %4, %7 : vector<128x128xi1>
    %cst = arith.constant 1.000000e+00 : f32
    %cst_1 = arith.constant 0.000000e+00 : f32
    %9 = vector.broadcast %cst : f32 to vector<128x128xf32>
    %10 = vector.broadcast %cst_1 : f32 to vector<128x128xf32>
    %11 = arith.select %8, %9, %10 : vector<128x128xi1>, vector<128x128xf32>
    %c0_2 = arith.constant 0 : index
    %c0_3 = arith.constant 0 : index
    %12 = vector.load %arg2[%c0_2, %c0_3] : memref<128x64xf32, #tpu.memory_space<vmem>>, vector<128x64xf32>
    %cst_4 = arith.constant dense<0.000000e+00> : vector<128x64xf32>
    %13 = tpu.matmul %11, %12, %cst_4 {dimension_numbers = #tpu.dot_dimension_numbers<[1], [0], [0], [1], [0, 0, 1, 1], [], []>} : vector<128x128xf32>, vector<128x64xf32>, vector<128x64xf32> -> vector<128x64xf32>
    %c0_5 = arith.constant 0 : index
    %c0_6 = arith.constant 0 : index
    %14 = vector.load %arg3[%c0_5, %c0_6] : memref<64x32xf32, #tpu.memory_space<vmem>>, vector<64x32xf32>
    %cst_7 = arith.constant dense<0.000000e+00> : vector<128x32xf32>
    %15 = tpu.matmul %13, %14, %cst_7 {dimension_numbers = #tpu.dot_dimension_numbers<[1], [0], [0], [1], [0, 0, 1, 1], [], []>} : vector<128x64xf32>, vector<64x32xf32>, vector<128x32xf32> -> vector<128x32xf32>
    %c0_8 = arith.constant 0 : index
    %c0_9 = arith.constant 0 : index
    %16 = vector.load %arg4[%c0_8, %c0_9] : memref<1x32xf32, #tpu.memory_space<vmem>>, vector<1x32xf32>
    %17 = vector.broadcast %16 : vector<1x32xf32> to vector<128x32xf32>
    %18 = arith.addf %15, %17 : vector<128x32xf32>
    %cst_10 = arith.constant 0.000000e+00 : f32
    %19 = vector.broadcast %cst_10 : f32 to vector<128x32xf32>
    %20 = arith.maximumf %18, %19 : vector<128x32xf32>
    %c0_11 = arith.constant 0 : index
    %c0_12 = arith.constant 0 : index
    %21 = vector.load %arg5[%c0_11, %c0_12] : memref<32x32xf32, #tpu.memory_space<vmem>>, vector<32x32xf32>
    %cst_13 = arith.constant dense<0.000000e+00> : vector<128x32xf32>
    %22 = tpu.matmul %20, %21, %cst_13 {dimension_numbers = #tpu.dot_dimension_numbers<[1], [0], [0], [1], [0, 0, 1, 1], [], []>} : vector<128x32xf32>, vector<32x32xf32>, vector<128x32xf32> -> vector<128x32xf32>
    %c0_14 = arith.constant 0 : index
    %c0_15 = arith.constant 0 : index
    %23 = vector.load %arg6[%c0_14, %c0_15] : memref<1x32xf32, #tpu.memory_space<vmem>>, vector<1x32xf32>
    %24 = vector.broadcast %23 : vector<1x32xf32> to vector<128x32xf32>
    %25 = arith.addf %22, %24 : vector<128x32xf32>
    %cst_16 = arith.constant 0.000000e+00 : f32
    %26 = vector.broadcast %cst_16 : f32 to vector<128x32xf32>
    %27 = arith.maximumf %25, %26 : vector<128x32xf32>
    %c0_17 = arith.constant 0 : index
    %c0_18 = arith.constant 0 : index
    %28 = vector.load %arg7[%c0_17, %c0_18] : memref<32x128xf32, #tpu.memory_space<vmem>>, vector<32x128xf32>
    %cst_19 = arith.constant dense<0.000000e+00> : vector<128x128xf32>
    %29 = tpu.matmul %27, %28, %cst_19 {dimension_numbers = #tpu.dot_dimension_numbers<[1], [0], [0], [1], [0, 0, 1, 1], [], []>} : vector<128x32xf32>, vector<32x128xf32>, vector<128x128xf32> -> vector<128x128xf32>
    %c0_20 = arith.constant 0 : index
    %c0_21 = arith.constant 0 : index
    %30 = vector.load %arg8[%c0_20, %c0_21] : memref<1x128xf32, #tpu.memory_space<vmem>>, vector<1x128xf32>
    %31 = vector.broadcast %30 : vector<1x128xf32> to vector<128x128xf32>
    %32 = arith.addf %29, %31 : vector<128x128xf32>
    %c0_22 = arith.constant 0 : index
    %c0_23 = arith.constant 0 : index
    %33 = vector.load %arg9[%c0_22, %c0_23] : memref<128x128xf32, #tpu.memory_space<vmem>>, vector<128x128xf32>
    tpu.vector_store %arg9[%c0_22, %c0_23], %32 {strides = array<i32>} : memref<128x128xf32, #tpu.memory_space<vmem>>, vector<128x128xf32>,
    return
  }
  func.func @transform_0(%arg0: i32) -> (i32, i32) {
    %c0_i32 = arith.constant 0 : i32
    %c0_i32_0 = arith.constant 0 : i32
    return %arg0, %c0_i32 : i32, i32
  }
  func.func @transform_1(%arg0: i32) -> (i32, i32) {
    %c0_i32 = arith.constant 0 : i32
    %c0_i32_0 = arith.constant 0 : i32
    %c0_i32_1 = arith.constant 0 : i32
    return %c0_i32, %c0_i32_0 : i32, i32
  }
  func.func @transform_2(%arg0: i32) -> (i32, i32) {
    %c0_i32 = arith.constant 0 : i32
    %c0_i32_0 = arith.constant 0 : i32
    %c0_i32_1 = arith.constant 0 : i32
    return %c0_i32, %c0_i32_0 : i32, i32
  }
  func.func @transform_3(%arg0: i32) -> (i32, i32) {
    %c0_i32 = arith.constant 0 : i32
    %c0_i32_0 = arith.constant 0 : i32
    %c0_i32_1 = arith.constant 0 : i32
    return %c0_i32, %c0_i32_0 : i32, i32
  }
  func.func @transform_4(%arg0: i32) -> (i32, i32) {
    %c0_i32 = arith.constant 0 : i32
    %c0_i32_0 = arith.constant 0 : i32
    %c0_i32_1 = arith.constant 0 : i32
    return %c0_i32, %c0_i32_0 : i32, i32
  }
  func.func @transform_5(%arg0: i32) -> (i32, i32) {
    %c0_i32 = arith.constant 0 : i32
    %c0_i32_0 = arith.constant 0 : i32
    %c0_i32_1 = arith.constant 0 : i32
    return %c0_i32, %c0_i32_0 : i32, i32
  }
  func.func @transform_6(%arg0: i32) -> (i32, i32) {
    %c0_i32 = arith.constant 0 : i32
    %c0_i32_0 = arith.constant 0 : i32
    %c0_i32_1 = arith.constant 0 : i32
    return %c0_i32, %c0_i32_0 : i32, i32
  }
  func.func @transform_7(%arg0: i32) -> (i32, i32) {
    %c0_i32 = arith.constant 0 : i32
    %c0_i32_0 = arith.constant 0 : i32
    %c0_i32_1 = arith.constant 0 : i32
    return %c0_i32, %c0_i32_0 : i32, i32
  }
  func.func @transform_8(%arg0: i32) -> (i32, i32) {
    %c0_i32 = arith.constant 0 : i32
    %c0_i32_0 = arith.constant 0 : i32
    return %arg0, %c0_i32 : i32, i32
  }
}

</mosaic_0001>

<bundles_post_ra>
// kernel: model_forward_padded.1
= control target key start
LH: loop header
LB: loop body
LE: loop exit
PB: predicated region body
PF: predicated region fallthrough
CT: control target
= control target key end

     0   :  { %13 = vsyncpa [#allocation3], 0  ;;  %s1691_s0 = inlined_call_operand.vmem [shape: s32[256,2], index: 0, kind: input, shape index: {}]   ;;  %s1692_s1 = inlined_call_operand.vmem [shape: f32[128,64], index: 1, kind: input, shape index: {}]   ;;  %s1693_s2 = inlined_call_operand.vmem [shape: f32[64,32], index: 2, kind: input, shape index: {}]   ;;  %s1694_s3 = inlined_call_operand.vmem [shape: f32[1,32], index: 3, kind: input, shape index: {}]   ;;  %s1695_s4 = inlined_call_operand.vmem [shape: f32[32,32], index: 4, kind: input, shape index: {}]   ;;  %s1696_s5 = inlined_call_operand.vmem [shape: f32[1,32], index: 5, kind: input, shape index: {}]   ;;  %s1697_s6 = inlined_call_operand.vmem [shape: f32[32,128], index: 6, kind: input, shape index: {}]   ;;  %s1698_s7 = inlined_call_operand.vmem [shape: f32[1,128], index: 7, kind: input, shape index: {}]   ;;  %s1699_s8 = inlined_call_operand.hbm [shape: f32[256,128], index: 8, kind: output, shape index: {}]  }
   0x1   :  { %15 = vsyncpa [#allocation3 + $0x1], 0  ;;  %s1322_s27 = smov 0   ;;  %s1324_s28 = smov 0  }
   0x2   :  { %s1326_s29 = smov 0   ;;  %s1328_s30 = smov 0  }
   0x3 LB: > { %s1343_s9 = sadd.s32 4294967295, %s1270_s30   ;;  %s1061_s10 = sadd.s32 4294967294, %s1270_s30   ;;  %s1270_s30 = sphi %s1328_s30, %s1705_s30   ;;  %s1266_s29 = sphi %s1326_s29, %s1704_s29   ;;  %s1262_s28 = sphi %s1324_s28, %s1703_s28   ;;  %s1258_s27 = sphi %s1322_s27, %s1702_s27  }
   0x4   : > { %s1347_s11 = sadd.s32 1, %s1270_s30   ;;  %s201_s12 = sadd.s32 1, %s1266_s29 }
   0x5   : > { %s198_s13 = ssub.s32 %s1270_s30, %s1347_s11  ;;  %p211_p0 = scmp.ne.s32.totalorder %s1266_s29, %s1262_s28 }
   0x6   : > { %p199_p1 = scmp.eq.s32.totalorder %s198_s13, 0  ;;  %p212_p2 = scmp.eq.s32.totalorder %s1343_s9, 1 }
   0x7   : > { %p217_p3 = scmp.ne.s32.totalorder %s1262_s28, %s1258_s27  ;;  %p218_p4 = scmp.eq.s32.totalorder %s1061_s10, 1 }
   0x8   : > { %s1358_s14 = scalar_select %p199_p1, %s1266_s29, %s201_s12  }
   0x9   : > { %p1360_p5 = por %p212_p2, %p211_p0  ;;  %p1364_p6 = por %p218_p4, %p217_p3 }
   0xa   : > { %p1064_p7 = scmp.ge.s32.totalorder %s1270_s30, 1  ;;  %p266_p8 = scmp.lt.s32.totalorder %s1270_s30, 3 }
   0xc   : > { %p267_p9 = pnand %p1064_p7, %p266_p8 }
   0xd   : > { %s1066_s17 = sshll.u32 (!%p267_p9), %s1343_s9, 4  ;;  %s297_s10 = sand.u32 (!%p267_p9), 1, %s1262_s28  }
   0xe   : > { %270 = sbr.rel (%p267_p9) target bundleno = 799 (0x31f), region = 52  ;;  %p301_p10 = scmp.lt.s32.totalorder (!%p267_p9), %s1066_s17, 31 }
   0xf   : > { %s1065_s12 = sshll.u32 (!%p267_p9), %s297_s10, 7  ;;  %s984_s25 = scalar_lea.sflag (!%p267_p9), [#allocation3], %s297_s10 }
  0x13   : > { %v1272_v0 = vmov 0   ;;  %s1707_s17 = smov (!%p301_p10, %s1066_s17), 31  ;;  %v1273_v4 = vmov 1   ;;  %v500_v10 = vld [vmem:[%s1692_s1 + $0x78] sm:$0xff]  ;;  %v499_v13 = vld [vmem:[%s1692_s1 + $0x70] sm:$0xff]  ;;  %v498_v14 = vld [vmem:[%s1692_s1 + $0x68] sm:$0xff]  ;;  %v323_v35 = vlaneseq }
  0x14   : > { %1184 = vset.pattern.permute.xlu1 %v1272_v0  ;;  %1182 = vset.pattern.permute.xlu0 %v1272_v0  ;;  %s1067_s18 = sshll.u32 %s1707_s17, 3  ;;  %v497_v15 = vld [vmem:[%s1692_s1 + $0x60] sm:$0xff]  ;;  %v496_v17 = vld [vmem:[%s1692_s1 + $0x58] sm:$0xff]  ;;  %v495_v18 = vld [vmem:[%s1692_s1 + $0x50] sm:$0xff]  ;;  %v1274_v40 = vmov 1.0   ;;  %s1639_s17 = scalar_lea.vmem [#allocation2], %s1065_s12 }
  0x15   : > { %1186 = vset.pattern.permute.xlu2 %v1272_v0  ;;  %s1377_s21 = scalar_lea.vmem %s1691_s0, %s1067_s18  ;;  %501 = vmatpush.msra.mxu0 %v500_v10  ;;  %v494_v19 = vld [vmem:[%s1692_s1 + $0x48] sm:$0xff]  ;;  %v493_v20 = vld [vmem:[%s1692_s1 + $0x40] sm:$0xff]  ;;  %v492_v21 = vld [vmem:[%s1692_s1 + $0x38] sm:$0xff]  ;;  %v1463_v37 = vand.u32 127, %v323_v35  ;;  %s1137_s18 = sshll.u32 %s1343_s9, 7 }
  0x16   : > { %v308_v1 = vld [vmem:[%s1377_s21 + $0x8] sm:$0xff]  ;;  %v307_v2 = vld [vmem:[%s1377_s21] sm:$0xff]  ;;  %v309_v3 = vld [vmem:[%s1377_s21 + $0x10] sm:$0xff]  ;;  %s995_s22 = scalar_lea.hbm %s1699_s8, %s1137_s18  ;;  %s996_s23 = sshll.u32 %s1639_s17, 4  ;;  %s997_s23 = int_to_ptr.vmem [resolvable:$true] %s996_s23 }
  0x17   : > { %329 = vperm.xlu1 %1184, %v308_v1   ;;  %326 = vperm.xlu0 %1182, %v307_v2   ;;  %v310_v5 = vld [vmem:[%s1377_s21 + $0x18] sm:$0xff]  ;;  %v311_v6 = vld [vmem:[%s1377_s21 + $0x20] sm:$0xff]  ;;  %v313_v7 = vld [vmem:[%s1377_s21 + $0x30] sm:$0xff]  ;;  %s998_s24 = sshll.u32 %s995_s22, 4  ;;  %s999_s24 = int_to_ptr.hbm [resolvable:$true] %s998_s24 }
  0x18   : > { %332 = vperm.xlu2 %1186, %v309_v3   ;;  %v312_v8 = vld [vmem:[%s1377_s21 + $0x28] sm:$0xff]  ;;  %v314_v11 = vld [vmem:[%s1377_s21 + $0x38] sm:$0xff]  ;;  %502 = vmatpush.msra.mxu0 %v499_v13  ;;  %v315_v16 = vld [vmem:[%s1377_s21 + $0x40] sm:$0xff]  ;;  %s1222_s26 = sshra.s32 %s999_s24, 4  ;;  %s1223_s26 = int_to_ptr.hbm [resolvable:$true] %s1222_s26 }
  0x19   : > { %v316_v9 = vld [vmem:[%s1377_s21 + $0x48] sm:$0xff]  ;;  %v318_v12 = vld [vmem:[%s1377_s21 + $0x58] sm:$0xff]  ;;  %v317_v22 = vld [vmem:[%s1377_s21 + $0x50] sm:$0xff]  ;;  %s1224_s9 = scalar_lea.hbm %s1223_s26, 128  ;;  %p1229_p0 = scmp.lt.s32.totalorder %s1223_s26, %s1699_s8 }
  0x1a   : > { %503 = vmatpush.msra.mxu0 %v498_v14  ;;  %v491_v23 = vld [vmem:[%s1692_s1 + $0x30] sm:$0xff]  ;;  %v319_v25 = vld [vmem:[%s1377_s21 + $0x60] sm:$0xff]  ;;  %v490_v26 = vld [vmem:[%s1692_s1 + $0x28] sm:$0xff]  ;;  %p1225_p11 = scmp.ne.s32.totalorder %s1223_s26, %s1224_s9 }
  0x1b   : > { %v321_v24 = vld [vmem:[%s1377_s21 + $0x70] sm:$0xff]  ;;  %v320_v27 = vld [vmem:[%s1377_s21 + $0x68] sm:$0xff]  ;;  %v489_v28 = vld [vmem:[%s1692_s1 + $0x20] sm:$0xff] }
  0x1c   : > { %504 = vmatpush.msra.mxu0 %v497_v15  ;;  %v488_v29 = vld [vmem:[%s1692_s1 + $0x18] sm:$0xff]  ;;  %v487_v30 = vld [vmem:[%s1692_s1 + $0x10] sm:$0xff]  ;;  %v486_v31 = vld [vmem:[%s1692_s1 + $0x8] sm:$0xff]  ;;  %p1226_p12 = pnand %p1225_p11, %p1360_p5 }
  0x1d   : > { %v485_v32 = vld [vmem:[%s1692_s1] sm:$0xff]  ;;  %v322_v33 = vld [vmem:[%s1377_s21 + $0x78] sm:$0xff]  ;;  %v572_v61 = vld [vmem:[%s1693_s2 + $0x30] sm:$0xff]  ;;  %s1228_s21 = scalar_lea.hbm %s1699_s8, 256 }
  0x1e   : > { %505 = vmatpush.msra.mxu0 %v496_v17  ;;  %v573_v58 = vld [vmem:[%s1693_s2 + $0x38] sm:$0xff]  ;;  %v571_v62 = vld [vmem:[%s1693_s2 + $0x28] sm:$0xff]  ;;  %p1227_p13 = pneg %p1226_p12  ;;  %p1230_p1 = scmp.lt.s32.totalorder %s1228_s21, %s1224_s9 }
  0x1f   : > { %1185 = vset.pattern.permute.xlu1 %v1273_v4  ;;  %1183 = vset.pattern.permute.xlu0 %v1273_v4 }
  0x20   : > { %393 = vperm.xlu1 %1185, %v308_v1   ;;  %390 = vperm.xlu0 %1183, %v307_v2   ;;  %v569_v2 = vld [vmem:[%s1693_s2 + $0x18] sm:$0xff]  ;;  %p1231_p2 = por %p1230_p1, %p1229_p0 }
  0x21   : > { %1187 = vset.pattern.permute.xlu2 %v1273_v4  ;;  %506 = vmatpush.msra.mxu0 %v495_v18 }
  0x22   : > { %396 = vperm.xlu2 %1187, %v309_v3   ;;  %635 = vmatpush.msra.mxu1 %v573_v58  ;;  %p1232_p3 = pnand %p1231_p2, %p1227_p13 }
  0x23   : > { %507 = vmatpush.msra.mxu0 %v494_v19 }
  0x24   : > { %636 = vmatpush.msra.mxu1 %v572_v61 }
  0x25   : > { %508 = vmatpush.msra.mxu0 %v493_v20 }
  0x26   : > { %637 = vmatpush.msra.mxu1 %v571_v62 }
  0x27   : > { %509 = vmatpush.msra.mxu0 %v492_v21 }
  0x28   : > { %1188 = vset.pattern.permute.xlu1 %v1272_v0  ;;  %1189 = vset.pattern.permute.xlu0 %v1272_v0 }
  0x29   : > { %335 = vperm.xlu1 %1188, %v310_v5   ;;  %338 = vperm.xlu0 %1189, %v311_v6  }
  0x2a   : > { %399 = vperm.xlu2 %1187, %v310_v5   ;;  %510 = vmatpush.msra.mxu0 %v491_v23  ;;  %v567_v5 = vld [vmem:[%s1693_s2 + $0x8] sm:$0xff] }
  0x2c   : > { %511 = vmatpush.msra.mxu0 %v490_v26  ;;  %v710_v26 = vld [vmem:[%s1695_s4 + $0x10] sm:$0xff] }
  0x2e   : > { %512 = vmatpush.msra.mxu0 %v489_v28 }
  0x30   : > { %513 = vmatpush.msra.mxu0 %v488_v29  ;;  %v708_v29 = vld [vmem:[%s1695_s4] sm:$0xff] }
  0x31   : > { %1190 = vset.pattern.permute.xlu1 %v1273_v4  ;;  %1192 = vset.pattern.permute.xlu0 %v1273_v4 }
  0x32   : > { %402 = vperm.xlu1 %1190, %v311_v6   ;;  %408 = vperm.xlu0 %1192, %v313_v7   ;;  %v566_v6 = vld [vmem:[%s1693_s2] sm:$0xff] }
  0x33   : > { %1191 = vset.pattern.permute.xlu2 %v1272_v0  ;;  %514 = vmatpush.msra.mxu0 %v487_v30 }
  0x34   : > { %341 = vperm.xlu2 %1191, %v312_v8  }
  0x35   : > { %515 = vmatpush.msra.mxu0 %v486_v31 }
  0x37   : > { %516 = vmatpush.msra.mxu0 %v485_v32 }
  0x3a   : > { %405 = vperm.xlu1 %1190, %v312_v8   ;;  %1195 = vset.pattern.permute.xlu0 %v1272_v0 }
  0x3b   : > { %353 = vperm.xlu0 %1195, %v316_v9  }
  0x3c   : > { %344 = vperm.xlu2 %1191, %v313_v7  }
  0x42   : > { %1193 = vset.pattern.permute.xlu1 %v1272_v0 }
  0x43   : > { %347 = vperm.xlu1 %1193, %v314_v11   ;;  %1198 = vset.pattern.permute.xlu0 %v1273_v4 }
  0x44   : > { %1194 = vset.pattern.permute.xlu2 %v1273_v4  ;;  %423 = vperm.xlu0 %1198, %v318_v12  }
  0x45   : > { %411 = vperm.xlu2 %1194, %v314_v11  }
  0x4b   : > { %350 = vperm.xlu1 %1193, %v315_v16  }
  0x4c   : > { %1201 = vset.pattern.permute.xlu0 %v1272_v0 }
  0x4d   : > { %414 = vperm.xlu2 %1194, %v315_v16   ;;  %368 = vperm.xlu0 %1201, %v321_v24  }
  0x53   : > { %1196 = vset.pattern.permute.xlu1 %v1273_v4 }
  0x54   : > { %417 = vperm.xlu1 %1196, %v316_v9  }
  0x55   : > { %1197 = vset.pattern.permute.xlu2 %v1272_v0  ;;  %1204 = vset.pattern.permute.xlu0 %v1273_v4 }
  0x56   : > { %356 = vperm.xlu2 %1197, %v317_v22  }
  0x5c   : > { %420 = vperm.xlu1 %1196, %v317_v22  }
  0x5e   : > { %359 = vperm.xlu2 %1197, %v318_v12  }
  0x64   : > { %1199 = vset.pattern.permute.xlu1 %v1272_v0 }
  0x65   : > { %362 = vperm.xlu1 %1199, %v319_v25  }
  0x66   : > { %1200 = vset.pattern.permute.xlu2 %v1273_v4 }
  0x67   : > { %426 = vperm.xlu2 %1200, %v319_v25   ;;  %v711_v25 = vld [vmem:[%s1695_s4 + $0x18] sm:$0xff] }
  0x68   : > { %777 = vmatpush.msra.mxu2 %v711_v25 }
  0x6a   : > { %778 = vmatpush.msra.mxu2 %v710_v26 }
  0x6d   : > { %365 = vperm.xlu1 %1199, %v320_v27  }
  0x6f   : > { %429 = vperm.xlu2 %1200, %v320_v27   ;;  %v709_v27 = vld [vmem:[%s1695_s4 + $0x8] sm:$0xff] }
  0x70   : > { %779 = vmatpush.msra.mxu2 %v709_v27 }
  0x72   : > { %v333_v39 = vpop.permute.xlu2 %332  ;;  %780 = vmatpush.msra.mxu2 %v708_v29 }
  0x73   : > { %vm375_vm6 = vcmp.eq.s32.totalorder %v1463_v37, %v333_v39 }
  0x75   : > { %1202 = vset.pattern.permute.xlu1 %v1273_v4  ;;  %v568_v4 = vld [vmem:[%s1693_s2 + $0x10] sm:$0xff] }
  0x76   : > { %432 = vperm.xlu1 %1202, %v321_v24  }
  0x77   : > { %1203 = vset.pattern.permute.xlu2 %v1272_v0  ;;  %v570_v0 = vld [vmem:[%s1693_s2 + $0x20] sm:$0xff] }
  0x78   : > { %371 = vperm.xlu2 %1203, %v322_v33   ;;  %638 = vmatpush.msra.mxu1 %v570_v0 }
  0x7a   : > { %639 = vmatpush.msra.mxu1 %v569_v2 }
  0x7c   : > { %v397_v42 = vpop.permute.xlu2 %396  ;;  %640 = vmatpush.msra.mxu1 %v568_v4 }
  0x7d   : > { %vm439_vm7 = vcmp.eq.s32.totalorder %v1463_v37, %v397_v42 }
  0x7e   : > { %435 = vperm.xlu1 %1202, %v322_v33   ;;  %vm455_vm8 = vmor %vm375_vm6, %vm439_vm7  ;;  %641 = vmatpush.msra.mxu1 %v567_v5  ;;  %v1568_v33 = vld [vmem:[%s1694_s3] ss:$0 sm:$0xff] }
  0x80   : > { %642 = vmatpush.msra.mxu1 %v566_v6  ;;  %v849_v6 = vld [vmem:[%s1697_s6 + $0x18] sm:$0xff] }
  0x81   : > { %914 = vmatpush.msra.mxu3 %v849_v6 }
  0x84   : > { %v400_v44 = vpop.permute.xlu2 %399 }
  0x85   : > { %vm440_vm9 = vcmp.eq.s32.totalorder %v1463_v37, %v400_v44 }
  0x89   : > { %v327_v34 = vpop.permute.xlu0 %326  ;;  %v330_v36 = vpop.permute.xlu1 %329 }
  0x8a   : > { %vm373_vm1 = vcmp.eq.s32.totalorder %v1463_v37, %v327_v34  ;;  %vm374_vm3 = vcmp.eq.s32.totalorder %v1463_v37, %v330_v36 }
  0x8e   : > { %v342_v47 = vpop.permute.xlu2 %341 }
  0x8f   : > { %vm378_vm15 = vcmp.eq.s32.totalorder %v1463_v37, %v342_v47 }
  0x92   : > { %v391_v38 = vpop.permute.xlu0 %390  ;;  %v394_v41 = vpop.permute.xlu1 %393 }
  0x93   : > { %vm437_vm0 = vcmp.eq.s32.totalorder %v1463_v37, %v391_v38  ;;  %vm438_vm4 = vcmp.eq.s32.totalorder %v1463_v37, %v394_v41 }
  0x94   : > { %vm453_vm2 = vmor %vm373_vm1, %vm437_vm0 }
  0x95   : > { %1068 = vmatmul.msk.f32.vlgmr.msra.gmra.mxu0 %vm453_vm2, %v1274_v40  ;;  %vm454_vm5 = vmor %vm374_vm3, %vm438_vm4 }
  0x96   : > { %v345_v49 = vpop.permute.xlu2 %344 }
  0x97   : > { %vm379_vm2 = vcmp.eq.s32.totalorder %v1463_v37, %v345_v49 }
  0x9b   : > { %v336_v43 = vpop.permute.xlu1 %335  ;;  %v339_v46 = vpop.permute.xlu0 %338 }
  0x9c   : > { %vm376_vm10 = vcmp.eq.s32.totalorder %v1463_v37, %v336_v43  ;;  %vm377_vm13 = vcmp.eq.s32.totalorder %v1463_v37, %v339_v46 }
  0x9d   : > { %1069 = vmatmul.msk.f32.gmra.mxu0 %vm454_vm5, %v1274_v40  ;;  %vm456_vm11 = vmor %vm376_vm10, %vm440_vm9 }
  0x9f   : > { %v412_v52 = vpop.permute.xlu2 %411 }
  0xa0   : > { %vm444_vm5 = vcmp.eq.s32.totalorder %v1463_v37, %v412_v52 }
  0xa4   : > { %v403_v45 = vpop.permute.xlu1 %402  ;;  %v409_v50 = vpop.permute.xlu0 %408 }
  0xa5   : > { %1070 = vmatmul.msk.f32.gmra.mxu0 %vm455_vm8, %v1274_v40  ;;  %vm441_vm12 = vcmp.eq.s32.totalorder %v1463_v37, %v403_v45  ;;  %vm443_vm3 = vcmp.eq.s32.totalorder %v1463_v37, %v409_v50 }
  0xa6   : > { %vm457_vm14 = vmor %vm377_vm13, %vm441_vm12 }
  0xa7   : > { %vm459_vm4 = vmor %vm379_vm2, %vm443_vm3  ;;  %v415_v54 = vpop.permute.xlu2 %414 }
  0xa8   : > { %vm445_vm8 = vcmp.eq.s32.totalorder %v1463_v37, %v415_v54 }
  0xac   : > { %v406_v48 = vpop.permute.xlu1 %405 }
  0xad   : > { %1071 = vmatmul.msk.f32.gmra.mxu0 %vm456_vm11, %v1274_v40  ;;  %vm442_vm0 = vcmp.eq.s32.totalorder %v1463_v37, %v406_v48  ;;  %v354_v56 = vpop.permute.xlu0 %353 }
  0xae   : > { %vm458_vm1 = vmor %vm378_vm15, %vm442_vm0  ;;  %vm382_vm12 = vcmp.eq.s32.totalorder %v1463_v37, %v354_v56 }
  0xb0   : > { %v357_v57 = vpop.permute.xlu2 %356 }
  0xb5   : > { %1072 = vmatmul.msk.f32.gmra.mxu0 %vm457_vm14, %v1274_v40  ;;  %v348_v51 = vpop.permute.xlu1 %347  ;;  %vm383_vm14 = vcmp.eq.s32.totalorder %v1463_v37, %v357_v57 }
  0xb6   : > { %vm380_vm6 = vcmp.eq.s32.totalorder %v1463_v37, %v348_v51  ;;  %v424_v63 = vpop.permute.xlu0 %423 }
  0xb7   : > { %vm460_vm7 = vmor %vm380_vm6, %vm444_vm5  ;;  %vm448_vm2 = vcmp.eq.s32.totalorder %v1463_v37, %v424_v63 }
  0xb8   : > { %v360_v60 = vpop.permute.xlu2 %359 }
  0xbd   : > { %1073 = vmatmul.msk.f32.gmra.mxu0 %vm458_vm1, %v1274_v40  ;;  %v351_v53 = vpop.permute.xlu1 %350  ;;  %vm384_vm1 = vcmp.eq.s32.totalorder %v1463_v37, %v360_v60 }
  0xbe   : > { %vm381_vm9 = vcmp.eq.s32.totalorder %v1463_v37, %v351_v53  ;;  %vm464_vm3 = vmor %vm384_vm1, %vm448_vm2  ;;  %vm716_vm1 = vcmask 261120  }
  0xbf   : > { %vm461_vm10 = vmor %vm381_vm9, %vm445_vm8  ;;  %v369_v10 = vpop.permute.xlu0 %368 }
  0xc1   : > { %v427_v3 = vpop.permute.xlu2 %426 }
  0xc5   : > { %1074 = vmatmul.msk.f32.gmra.mxu0 %vm459_vm4, %v1274_v40  ;;  %vm449_vm4 = vcmp.eq.s32.totalorder %v1463_v37, %v427_v3 }
  0xc6   : > { %v418_v55 = vpop.permute.xlu1 %417 }
  0xc7   : > { %vm446_vm11 = vcmp.eq.s32.totalorder %v1463_v37, %v418_v55 }
  0xc8   : > { %vm462_vm13 = vmor %vm382_vm12, %vm446_vm11  ;;  %vm387_vm11 = vcmp.eq.s32.totalorder %v1463_v37, %v369_v10  ;;  %v848_v10 = vld [vmem:[%s1697_s6 + $0x10] sm:$0xff] }
  0xc9   : > { %v430_v8 = vpop.permute.xlu2 %429  ;;  %915 = vmatpush.msra.mxu3 %v848_v10 }
  0xcd   : > { %1075 = vmatmul.msk.f32.gmra.mxu0 %vm460_vm7, %v1274_v40  ;;  %vm450_vm7 = vcmp.eq.s32.totalorder %v1463_v37, %v430_v8 }
  0xce   : > { %v421_v59 = vpop.permute.xlu1 %420 }
  0xcf   : > { %vm447_vm15 = vcmp.eq.s32.totalorder %v1463_v37, %v421_v59 }
  0xd0   : > { %vm463_vm0 = vmor %vm383_vm14, %vm447_vm15 }
  0xd2   : > { %v372_v11 = vpop.permute.xlu2 %371 }
  0xd5   : > { %1076 = vmatmul.msk.f32.gmra.mxu0 %vm461_vm10, %v1274_v40 }
  0xd7   : > { %v363_v1 = vpop.permute.xlu1 %362 }
  0xd8   : > { %vm385_vm5 = vcmp.eq.s32.totalorder %v1463_v37, %v363_v1 }
  0xd9   : > { %vm465_vm6 = vmor %vm385_vm5, %vm449_vm4 }
  0xdd   : > { %1077 = vmatmul.msk.f32.gmra.mxu0 %vm462_vm13, %v1274_v40  ;;  %vm388_vm13 = vcmp.eq.s32.totalorder %v1463_v37, %v372_v11 }
  0xdf   : > { %v366_v7 = vpop.permute.xlu1 %365 }
  0xe0   : > { %vm386_vm8 = vcmp.eq.s32.totalorder %v1463_v37, %v366_v7 }
  0xe1   : > { %vm466_vm9 = vmor %vm386_vm8, %vm450_vm7 }
  0xe5   : > { %1078 = vmatmul.msk.f32.gmra.mxu0 %vm463_vm0, %v1274_v40  ;;  %vm578_vm0 = vcmask 523264  }
  0xe8   : > { %v433_v9 = vpop.permute.xlu1 %432 }
  0xe9   : > { %vm451_vm10 = vcmp.eq.s32.totalorder %v1463_v37, %v433_v9 }
  0xea   : > { %vm467_vm12 = vmor %vm387_vm11, %vm451_vm10 }
  0xed   : > { %1079 = vmatmul.msk.f32.gmra.mxu0 %vm464_vm3, %v1274_v40 }
  0xf0   : > { %v436_v12 = vpop.permute.xlu1 %435 }
  0xf1   : > { %vm452_vm14 = vcmp.eq.s32.totalorder %v1463_v37, %v436_v12 }
  0xf2   : > { %vm468_vm15 = vmor %vm388_vm13, %vm452_vm14 }
  0xf5   : > { %1080 = vmatmul.msk.f32.gmra.mxu0 %vm465_vm6, %v1274_v40 }
  0xfd   : > { %1081 = vmatmul.msk.f32.gmra.mxu0 %vm466_vm9, %v1274_v40 }
 0x105   : > { %1082 = vmatmul.msk.f32.gmra.mxu0 %vm467_vm12, %v1274_v40 }
 0x10d   : > { %1083 = vmatmul.msk.f32.gmra.mxu0 %vm468_vm15, %v1274_v40 }
 0x112   : > { %v518_v13 = vpop.f32.mrf.mxu0 }
 0x113   : > { %1084 = vmatmul.msk.f32.vlgmr.msra.gmra.mxu1 %vm578_vm0, %v518_v13  ;;  %v847_v13 = vld [vmem:[%s1697_s6 + $0x8] sm:$0xff] }
 0x114   : > { %916 = vmatpush.msra.mxu3 %v847_v13 }
 0x11a   : > { %v521_v14 = vpop.f32.mrf.mxu0 }
 0x11b   : > { %1085 = vmatmul.msk.f32.gmra.mxu1 %vm578_vm0, %v521_v14 }
 0x122   : > { %v524_v15 = vpop.f32.mrf.mxu0 }
 0x123   : > { %1086 = vmatmul.msk.f32.gmra.mxu1 %vm578_vm0, %v524_v15  ;;  %v846_v15 = vld [vmem:[%s1697_s6] sm:$0xff] }
 0x124   : > { %917 = vmatpush.msra.mxu3 %v846_v15 }
 0x12a   : > { %v527_v16 = vpop.f32.mrf.mxu0 }
 0x12b   : > { %1087 = vmatmul.msk.f32.gmra.mxu1 %vm578_vm0, %v527_v16 }
 0x132   : > { %v530_v17 = vpop.f32.mrf.mxu0 }
 0x133   : > { %1088 = vmatmul.msk.f32.gmra.mxu1 %vm578_vm0, %v530_v17 }
 0x13a   : > { %v533_v18 = vpop.f32.mrf.mxu0 }
 0x13b   : > { %1089 = vmatmul.msk.f32.gmra.mxu1 %vm578_vm0, %v533_v18 }
 0x142   : > { %v536_v19 = vpop.f32.mrf.mxu0 }
 0x143   : > { %1090 = vmatmul.msk.f32.gmra.mxu1 %vm578_vm0, %v536_v19 }
 0x14a   : > { %v539_v20 = vpop.f32.mrf.mxu0 }
 0x14b   : > { %1091 = vmatmul.msk.f32.gmra.mxu1 %vm578_vm0, %v539_v20 }
 0x152   : > { %v542_v21 = vpop.f32.mrf.mxu0 }
 0x153   : > { %1092 = vmatmul.msk.f32.gmra.mxu1 %vm578_vm0, %v542_v21 }
 0x15a   : > { %v545_v22 = vpop.f32.mrf.mxu0 }
 0x15b   : > { %1093 = vmatmul.msk.f32.gmra.mxu1 %vm578_vm0, %v545_v22  ;;  %v1206_v22 = vld [vmem:[%s1696_s5] ss:$0 sm:$0xff] }
 0x162   : > { %v548_v23 = vpop.f32.mrf.mxu0 }
 0x163   : > { %1094 = vmatmul.msk.f32.gmra.mxu1 %vm578_vm0, %v548_v23 }
 0x16a   : > { %v551_v24 = vpop.f32.mrf.mxu0 }
 0x16b   : > { %1095 = vmatmul.msk.f32.gmra.mxu1 %vm578_vm0, %v551_v24 }
 0x172   : > { %v554_v28 = vpop.f32.mrf.mxu0 }
 0x173   : > { %1096 = vmatmul.msk.f32.gmra.mxu1 %vm578_vm0, %v554_v28 }
 0x17a   : > { %v557_v30 = vpop.f32.mrf.mxu0 }
 0x17b   : > { %1097 = vmatmul.msk.f32.gmra.mxu1 %vm578_vm0, %v557_v30 }
 0x182   : > { %v560_v31 = vpop.f32.mrf.mxu0 }
 0x183   : > { %1098 = vmatmul.msk.f32.gmra.mxu1 %vm578_vm0, %v560_v31 }
 0x18a   : > { %v563_v32 = vpop.f32.mrf.mxu0 }
 0x18b   : > { %1099 = vmatmul.msk.f32.gmra.mxu1 %vm578_vm0, %v563_v32 }
 0x190   : > { %v644_v34 = vpop.f32.mrf.mxu1 }
 0x191   : > { %v645_v35 = vadd.f32 %v1568_v33, %v644_v34 }
 0x193   : > { %v692_v36 = vmax.f32 %v645_v35, 0.0 }
 0x195   : > { %1100 = vmatmul.msk.f32.vlgmr.msra.gmra.mxu2 %vm716_vm1, %v692_v36 }
 0x198   : > { %v647_v37 = vpop.f32.mrf.mxu1 }
 0x199   : > { %v648_v38 = vadd.f32 %v1568_v33, %v647_v37 }
 0x19b   : > { %v693_v39 = vmax.f32 %v648_v38, 0.0 }
 0x19d   : > { %1101 = vmatmul.msk.f32.gmra.mxu2 %vm716_vm1, %v693_v39 }
 0x1a0   : > { %v650_v40 = vpop.f32.mrf.mxu1 }
 0x1a1   : > { %v651_v41 = vadd.f32 %v1568_v33, %v650_v40 }
 0x1a3   : > { %v694_v42 = vmax.f32 %v651_v41, 0.0 }
 0x1a5   : > { %1102 = vmatmul.msk.f32.gmra.mxu2 %vm716_vm1, %v694_v42 }
 0x1a8   : > { %v653_v43 = vpop.f32.mrf.mxu1 }
 0x1a9   : > { %v654_v44 = vadd.f32 %v1568_v33, %v653_v43 }
 0x1ab   : > { %v695_v45 = vmax.f32 %v654_v44, 0.0 }
 0x1ad   : > { %1103 = vmatmul.msk.f32.gmra.mxu2 %vm716_vm1, %v695_v45 }
 0x1b0   : > { %v656_v46 = vpop.f32.mrf.mxu1 }
 0x1b1   : > { %v657_v47 = vadd.f32 %v1568_v33, %v656_v46 }
 0x1b3   : > { %v696_v48 = vmax.f32 %v657_v47, 0.0 }
 0x1b5   : > { %1104 = vmatmul.msk.f32.gmra.mxu2 %vm716_vm1, %v696_v48 }
 0x1b8   : > { %v659_v49 = vpop.f32.mrf.mxu1 }
 0x1b9   : > { %v660_v50 = vadd.f32 %v1568_v33, %v659_v49 }
 0x1bb   : > { %v697_v51 = vmax.f32 %v660_v50, 0.0 }
 0x1bd   : > { %1105 = vmatmul.msk.f32.gmra.mxu2 %vm716_vm1, %v697_v51 }
 0x1c0   : > { %v662_v52 = vpop.f32.mrf.mxu1 }
 0x1c1   : > { %v663_v53 = vadd.f32 %v1568_v33, %v662_v52 }
 0x1c3   : > { %v698_v54 = vmax.f32 %v663_v53, 0.0 }
 0x1c5   : > { %1106 = vmatmul.msk.f32.gmra.mxu2 %vm716_vm1, %v698_v54 }
 0x1c8   : > { %v665_v55 = vpop.f32.mrf.mxu1 }
 0x1c9   : > { %v666_v56 = vadd.f32 %v1568_v33, %v665_v55 }
 0x1cb   : > { %v699_v57 = vmax.f32 %v666_v56, 0.0 }
 0x1cd   : > { %1107 = vmatmul.msk.f32.gmra.mxu2 %vm716_vm1, %v699_v57 }
 0x1d0   : > { %v668_v58 = vpop.f32.mrf.mxu1 }
 0x1d1   : > { %v669_v59 = vadd.f32 %v1568_v33, %v668_v58 }
 0x1d3   : > { %v700_v60 = vmax.f32 %v669_v59, 0.0 }
 0x1d5   : > { %1108 = vmatmul.msk.f32.gmra.mxu2 %vm716_vm1, %v700_v60 }
 0x1d8   : > { %v671_v61 = vpop.f32.mrf.mxu1 }
 0x1d9   : > { %v672_v62 = vadd.f32 %v1568_v33, %v671_v61 }
 0x1db   : > { %v701_v63 = vmax.f32 %v672_v62, 0.0 }
 0x1dd   : > { %1109 = vmatmul.msk.f32.gmra.mxu2 %vm716_vm1, %v701_v63 }
 0x1e0   : > { %v674_v0 = vpop.f32.mrf.mxu1 }
 0x1e1   : > { %v675_v1 = vadd.f32 %v1568_v33, %v674_v0 }
 0x1e3   : > { %v702_v2 = vmax.f32 %v675_v1, 0.0 }
 0x1e5   : > { %1110 = vmatmul.msk.f32.gmra.mxu2 %vm716_vm1, %v702_v2 }
 0x1e8   : > { %v677_v3 = vpop.f32.mrf.mxu1 }
 0x1e9   : > { %v678_v4 = vadd.f32 %v1568_v33, %v677_v3 }
 0x1eb   : > { %v703_v5 = vmax.f32 %v678_v4, 0.0 }
 0x1ed   : > { %1111 = vmatmul.msk.f32.gmra.mxu2 %vm716_vm1, %v703_v5 }
 0x1f0   : > { %v680_v7 = vpop.f32.mrf.mxu1 }
 0x1f1   : > { %v681_v8 = vadd.f32 %v1568_v33, %v680_v7  ;;  %v1207_v7 = vld [vmem:[%s1698_s7] ss:$0 sm:$0xff] }
 0x1f3   : > { %v704_v9 = vmax.f32 %v681_v8, 0.0 }
 0x1f5   : > { %1112 = vmatmul.msk.f32.gmra.mxu2 %vm716_vm1, %v704_v9 }
 0x1f8   : > { %v683_v11 = vpop.f32.mrf.mxu1 }
 0x1f9   : > { %v684_v12 = vadd.f32 %v1568_v33, %v683_v11 }
 0x1fb   : > { %v705_v14 = vmax.f32 %v684_v12, 0.0 }
 0x1fd   : > { %1113 = vmatmul.msk.f32.gmra.mxu2 %vm716_vm1, %v705_v14 }
 0x200   : > { %v686_v16 = vpop.f32.mrf.mxu1 }
 0x201   : > { %v687_v17 = vadd.f32 %v1568_v33, %v686_v16 }
 0x203   : > { %v706_v18 = vmax.f32 %v687_v17, 0.0 }
 0x205   : > { %1114 = vmatmul.msk.f32.gmra.mxu2 %vm716_vm1, %v706_v18 }
 0x208   : > { %v689_v19 = vpop.f32.mrf.mxu1 }
 0x209   : > { %v690_v20 = vadd.f32 %v1568_v33, %v689_v19 }
 0x20b   : > { %v707_v21 = vmax.f32 %v690_v20, 0.0 }
 0x20d   : > { %1115 = vmatmul.msk.f32.gmra.mxu2 %vm716_vm1, %v707_v21 }
 0x218   : > { %v782_v23 = vpop.f32.mrf.mxu2 }
 0x219   : > { %v783_v24 = vadd.f32 %v1206_v22, %v782_v23 }
 0x21b   : > { %v830_v25 = vmax.f32 %v783_v24, 0.0 }
 0x21d   : > { %1116 = vmatmul.msk.f32.vlgmr.msra.gmra.mxu3 %vm716_vm1, %v830_v25 }
 0x220   : > { %v785_v26 = vpop.f32.mrf.mxu2 }
 0x221   : > { %v786_v27 = vadd.f32 %v1206_v22, %v785_v26 }
 0x223   : > { %v831_v28 = vmax.f32 %v786_v27, 0.0 }
 0x225   : > { %1117 = vmatmul.msk.f32.gmra.mxu3 %vm716_vm1, %v831_v28 }
 0x228   : > { %v788_v29 = vpop.f32.mrf.mxu2 }
 0x229   : > { %v789_v30 = vadd.f32 %v1206_v22, %v788_v29 }
 0x22b   : > { %v832_v31 = vmax.f32 %v789_v30, 0.0 }
 0x22d   : > { %1118 = vmatmul.msk.f32.gmra.mxu3 %vm716_vm1, %v832_v31 }
 0x230   : > { %v791_v32 = vpop.f32.mrf.mxu2 }
 0x231   : > { %v792_v33 = vadd.f32 %v1206_v22, %v791_v32 }
 0x233   : > { %v833_v34 = vmax.f32 %v792_v33, 0.0 }
 0x235   : > { %1119 = vmatmul.msk.f32.gmra.mxu3 %vm716_vm1, %v833_v34 }
 0x238   : > { %v794_v35 = vpop.f32.mrf.mxu2 }
 0x239   : > { %v795_v36 = vadd.f32 %v1206_v22, %v794_v35 }
 0x23b   : > { %v834_v37 = vmax.f32 %v795_v36, 0.0 }
 0x23d   : > { %1120 = vmatmul.msk.f32.gmra.mxu3 %vm716_vm1, %v834_v37 }
 0x240   : > { %v797_v38 = vpop.f32.mrf.mxu2 }
 0x241   : > { %v798_v39 = vadd.f32 %v1206_v22, %v797_v38 }
 0x243   : > { %v835_v40 = vmax.f32 %v798_v39, 0.0 }
 0x245   : > { %1121 = vmatmul.msk.f32.gmra.mxu3 %vm716_vm1, %v835_v40 }
 0x248   : > { %v800_v41 = vpop.f32.mrf.mxu2 }
 0x249   : > { %v801_v42 = vadd.f32 %v1206_v22, %v800_v41 }
 0x24b   : > { %v836_v43 = vmax.f32 %v801_v42, 0.0 }
 0x24d   : > { %1122 = vmatmul.msk.f32.gmra.mxu3 %vm716_vm1, %v836_v43 }
 0x250   : > { %v803_v44 = vpop.f32.mrf.mxu2 }
 0x251   : > { %v804_v45 = vadd.f32 %v1206_v22, %v803_v44 }
 0x253   : > { %v837_v46 = vmax.f32 %v804_v45, 0.0 }
 0x255   : > { %1123 = vmatmul.msk.f32.gmra.mxu3 %vm716_vm1, %v837_v46 }
 0x258   : > { %v806_v47 = vpop.f32.mrf.mxu2 }
 0x259   : > { %v807_v48 = vadd.f32 %v1206_v22, %v806_v47 }
 0x25b   : > { %v838_v49 = vmax.f32 %v807_v48, 0.0 }
 0x25d   : > { %1124 = vmatmul.msk.f32.gmra.mxu3 %vm716_vm1, %v838_v49 }
 0x260   : > { %v809_v50 = vpop.f32.mrf.mxu2 }
 0x261   : > { %v810_v51 = vadd.f32 %v1206_v22, %v809_v50 }
 0x263   : > { %v839_v52 = vmax.f32 %v810_v51, 0.0 }
 0x265   : > { %1125 = vmatmul.msk.f32.gmra.mxu3 %vm716_vm1, %v839_v52 }
 0x268   : > { %v812_v53 = vpop.f32.mrf.mxu2 }
 0x269   : > { %v813_v54 = vadd.f32 %v1206_v22, %v812_v53 }
 0x26b   : > { %v840_v55 = vmax.f32 %v813_v54, 0.0 }
 0x26d   : > { %1126 = vmatmul.msk.f32.gmra.mxu3 %vm716_vm1, %v840_v55 }
 0x270   : > { %v815_v56 = vpop.f32.mrf.mxu2 }
 0x271   : > { %v816_v57 = vadd.f32 %v1206_v22, %v815_v56 }
 0x273   : > { %v841_v58 = vmax.f32 %v816_v57, 0.0 }
 0x275   : > { %1127 = vmatmul.msk.f32.gmra.mxu3 %vm716_vm1, %v841_v58 }
 0x278   : > { %v818_v59 = vpop.f32.mrf.mxu2 }
 0x279   : > { %v819_v60 = vadd.f32 %v1206_v22, %v818_v59 }
 0x27b   : > { %v842_v61 = vmax.f32 %v819_v60, 0.0 }
 0x27d   : > { %1128 = vmatmul.msk.f32.gmra.mxu3 %vm716_vm1, %v842_v61 }
 0x280   : > { %v821_v62 = vpop.f32.mrf.mxu2 }
 0x281   : > { %v822_v63 = vadd.f32 %v1206_v22, %v821_v62 }
 0x283   : > { %v843_v0 = vmax.f32 %v822_v63, 0.0 }
 0x285   : > { %1129 = vmatmul.msk.f32.gmra.mxu3 %vm716_vm1, %v843_v0 }
 0x288   : > { %v824_v1 = vpop.f32.mrf.mxu2 }
 0x289   : > { %v825_v2 = vadd.f32 %v1206_v22, %v824_v1 }
 0x28b   : > { %v844_v3 = vmax.f32 %v825_v2, 0.0 }
 0x28d   : > { %1130 = vmatmul.msk.f32.gmra.mxu3 %vm716_vm1, %v844_v3 }
 0x290   : > { %v827_v4 = vpop.f32.mrf.mxu2 }
 0x291   : > { %v828_v5 = vadd.f32 %v1206_v22, %v827_v4 }
 0x293   : > { %v845_v6 = vmax.f32 %v828_v5, 0.0 }
 0x295   : > { %1131 = vmatmul.msk.f32.gmra.mxu3 %vm716_vm1, %v845_v6 }
 0x2a0   : > { %v919_v8 = vpop.f32.mrf.mxu3 }
 0x2a1   : > { %v920_v9 = vadd.f32 %v1207_v7, %v919_v8 }
 0x2a3   : > { %967 = vst [vmem:[%s1639_s17] sm:$0xff] %v920_v9 }
 0x2a8   : > { %v922_v10 = vpop.f32.mrf.mxu3 }
 0x2a9   : > { %v923_v11 = vadd.f32 %v1207_v7, %v922_v10 }
 0x2ab   : > { %968 = vst [vmem:[%s1639_s17 + $0x8] sm:$0xff] %v923_v11 }
 0x2b0   : > { %v925_v12 = vpop.f32.mrf.mxu3 }
 0x2b1   : > { %v926_v13 = vadd.f32 %v1207_v7, %v925_v12 }
 0x2b3   : > { %969 = vst [vmem:[%s1639_s17 + $0x10] sm:$0xff] %v926_v13 }
 0x2b8   : > { %v928_v14 = vpop.f32.mrf.mxu3 }
 0x2b9   : > { %v929_v15 = vadd.f32 %v1207_v7, %v928_v14 }
 0x2bb   : > { %970 = vst [vmem:[%s1639_s17 + $0x18] sm:$0xff] %v929_v15 }
 0x2c0   : > { %v931_v16 = vpop.f32.mrf.mxu3 }
 0x2c1   : > { %v932_v17 = vadd.f32 %v1207_v7, %v931_v16 }
 0x2c3   : > { %971 = vst [vmem:[%s1639_s17 + $0x20] sm:$0xff] %v932_v17 }
 0x2c8   : > { %v934_v18 = vpop.f32.mrf.mxu3 }
 0x2c9   : > { %v935_v19 = vadd.f32 %v1207_v7, %v934_v18 }
 0x2cb   : > { %972 = vst [vmem:[%s1639_s17 + $0x28] sm:$0xff] %v935_v19 }
 0x2d0   : > { %v937_v20 = vpop.f32.mrf.mxu3 }
 0x2d1   : > { %v938_v21 = vadd.f32 %v1207_v7, %v937_v20 }
 0x2d3   : > { %973 = vst [vmem:[%s1639_s17 + $0x30] sm:$0xff] %v938_v21 }
 0x2d8   : > { %v940_v22 = vpop.f32.mrf.mxu3 }
 0x2d9   : > { %v941_v23 = vadd.f32 %v1207_v7, %v940_v22 }
 0x2db   : > { %974 = vst [vmem:[%s1639_s17 + $0x38] sm:$0xff] %v941_v23 }
 0x2e0   : > { %v943_v24 = vpop.f32.mrf.mxu3 }
 0x2e1   : > { %v944_v25 = vadd.f32 %v1207_v7, %v943_v24 }
 0x2e3   : > { %975 = vst [vmem:[%s1639_s17 + $0x40] sm:$0xff] %v944_v25 }
 0x2e8   : > { %v946_v26 = vpop.f32.mrf.mxu3 }
 0x2e9   : > { %v947_v27 = vadd.f32 %v1207_v7, %v946_v26 }
 0x2eb   : > { %976 = vst [vmem:[%s1639_s17 + $0x48] sm:$0xff] %v947_v27 }
 0x2f0   : > { %v949_v28 = vpop.f32.mrf.mxu3 }
 0x2f1   : > { %v950_v29 = vadd.f32 %v1207_v7, %v949_v28 }
 0x2f3   : > { %977 = vst [vmem:[%s1639_s17 + $0x50] sm:$0xff] %v950_v29 }
 0x2f8   : > { %v952_v30 = vpop.f32.mrf.mxu3 }
 0x2f9   : > { %v953_v31 = vadd.f32 %v1207_v7, %v952_v30 }
 0x2fb   : > { %978 = vst [vmem:[%s1639_s17 + $0x58] sm:$0xff] %v953_v31 }
 0x300   : > { %v955_v32 = vpop.f32.mrf.mxu3 }
 0x301   : > { %v956_v33 = vadd.f32 %v1207_v7, %v955_v32 }
 0x303   : > { %979 = vst [vmem:[%s1639_s17 + $0x60] sm:$0xff] %v956_v33 }
 0x308   : > { %v958_v34 = vpop.f32.mrf.mxu3 }
 0x309   : > { %v959_v35 = vadd.f32 %v1207_v7, %v958_v34 }
 0x30b   : > { %980 = vst [vmem:[%s1639_s17 + $0x68] sm:$0xff] %v959_v35 }
 0x310   : > { %v961_v36 = vpop.f32.mrf.mxu3 }
 0x311   : > { %v962_v37 = vadd.f32 %v1207_v7, %v961_v36 }
 0x313   : > { %981 = vst [vmem:[%s1639_s17 + $0x70] sm:$0xff] %v962_v37 }
 0x318   : > { %v964_v38 = vpop.f32.mrf.mxu3 }
 0x319   : > { %v965_v39 = vadd.f32 %v1207_v7, %v964_v38 }
 0x31b   : > { %982 = vst [vmem:[%s1639_s17 + $0x78] sm:$0xff] %v965_v39 }
 0x31c   : > { %1235 = shalt.err (!%p1232_p3)
}
 0x31d   : > { %s1275_s10 = smov 128   ;;  %s1276_s17 = smov 8  }
 0x31e   : > { %1138 = dma.vmem_to_hbm [thread:$0]  (%p1360_p5), %s997_s23, 2048, %s999_s24, %s984_s25, %s1275_s10, %s1275_s10, %s1276_s17  }
 0x31f PF: > { %p1144_p4 = scmp.ge.s32.totalorder %s1270_s30, 2  ;;  %s1013_s20 = sand.u32 1, %s1258_s27  }
 0x320   : > { %s1014_s22 = scalar_lea.sflag [#allocation3], %s1013_s20 }
 0x321   : > { %p1141_p7 = pnand %p1144_p4, %p1364_p6 }
 0x323   : > { %p1142_p8 = pneg %p1141_p7 }
 0x325   : > { %1253 = dma.done.wait (%p1142_p8), %s1014_s22, 2048  }
 0x326   : > { %1255 = vsyncadd (%p1142_p8), %s1014_s22, 4294965248  ;;  %p18_p9 = scmp.ge.s32.totalorder %s1347_s11, 4   ;;  %s1702_s27 = smov %s1262_s28 }
 0x327   : > { %s1703_s28 = smov %s1266_s29  ;;  %s1704_s29 = smov %s1358_s14 }
 0x328   : > { %s1705_s30 = smov %s1347_s11  ;;  %20 = sbr.rel (!%p18_p9) target bundleno = 3 (0x3), region = 87 }
 0x32d   :  { %1020 = vsyncpa [#allocation3], 1 }
 0x32e   :  { %1022 = vsyncpa [#allocation3 + $0x1], 1 }

</bundles_post_ra>
